<compile_context>
chip_gen: v7x
topology: tpu7x:2x2x1
jax: 0.10.0
libtpu: 0.0.40
codegen_flags: <defaults>
</compile_context>

<pallas_src>
import math

import jax
import jax.numpy as jnp
from jax import lax
from jax.experimental import pallas as pl
from jax.experimental.pallas import tpu as pltpu


def _round_up(x, m):
    return (x + m - 1) // m * m


# ----------------------------------------------------------------------------
# Pallas kernel: fused 1x1-conv (trans-LHS matmul) + bias + log_softmax
# ----------------------------------------------------------------------------
def _decoder_kernel(x_ref, w_ref, b_ref, o_ref):
    """x_ref: (1, C_in, TILE_T)  NCW activation tile (bf16), C_in on sublanes
    w_ref: (C_in, Vp)            pointwise conv weight (bf16), vocab padded
    b_ref: (1, Vp)               f32 bias; padded classes carry -1e30
    o_ref: (1, TILE_T, Vp)       bf16 log-probabilities (lane-dense store)
    """
    # Contract over C_in (dim 0 of both operands) == Conv1d(kernel_size=1).
    # Keeping the NCW layout and doing a trans-LHS matmul avoids any HBM
    # transpose of the activation in the wrapper.
    logits = lax.dot_general(
        x_ref[0], w_ref[...],
        dimension_numbers=(((0,), (0,)), ((), ())),
        preferred_element_type=jnp.float32)            # (TILE_T, Vp), f32 acc
    logits = logits + b_ref[...]

    # numerically-stable log_softmax over the vocab (lane) axis, in f32
    m = jnp.max(logits, axis=-1, keepdims=True)
    shifted = logits - m
    lse = jnp.log(jnp.sum(jnp.exp(shifted), axis=-1, keepdims=True))
    o_ref[0] = (shifted - lse).astype(o_ref.dtype)


# ----------------------------------------------------------------------------
# Wrapper: layout plumbing (no activation transpose / pad / slice copies)
# ----------------------------------------------------------------------------
def jasper_decoder_forward(encoder_output, weight, bias, *, tile_t=512,
                           out_dtype=jnp.bfloat16):
    """encoder_output: (B, feat_in, T)  NCW, as produced by JasperEncoder.
    weight:            (V, feat_in, 1)  PyTorch Conv1d weight (V = classes+1).
    bias:              (V,)
    Returns bf16 log-probabilities of shape (B, T, Vp) where Vp = V rounded up
    to a multiple of 128; classes [V:Vp) hold ~-1e30 (ignore or slice them in
    the consumer -- slicing here would cost an extra full HBM pass)."""
    B, c_in, T = encoder_output.shape
    V = weight.shape[0]
    assert weight.shape == (V, c_in, 1)
    vp = _round_up(V, 128)                       # lane-dense vocab axis

    # bf16 feeds: half the DMA bytes, native bf16 MXU; f32 accumulation in-kernel.
    x = encoder_output.astype(jnp.bfloat16)      # stays NCW -- no transpose
    w = jnp.transpose(weight[:, :, 0], (1, 0)).astype(jnp.bfloat16)   # (C_in, V)
    w = jnp.pad(w, ((0, 0), (0, vp - V)))
    # padded classes get a huge negative bias -> exp() == 0 in the logsumexp
    b = jnp.pad(bias.astype(jnp.float32), (0, vp - V),
                constant_values=-1e30).reshape(1, vp)

    # time tile: big for DMA efficiency, multiple of 128 (lane axis of the
    # NCW input block), or the full (short) time axis.
    if T >= 128:
        tile = min(_round_up(tile_t, 128), _round_up(T, 128))
    else:
        tile = T

    grid = (B, pl.cdiv(T, tile))                 # no jnp.pad of the time axis
    out = pl.pallas_call(
        _decoder_kernel,
        out_shape=jax.ShapeDtypeStruct((B, T, vp), out_dtype),
        grid_spec=pltpu.PrefetchScalarGridSpec(
            num_scalar_prefetch=0,
            grid=grid,
            in_specs=[
                pl.BlockSpec((1, c_in, tile), lambda bi, ti: (bi, 0, ti)),
                # weight / bias keep a constant block index -> DMA'd once,
                # VMEM-resident for the whole grid.
                pl.BlockSpec((c_in, vp), lambda bi, ti: (0, 0)),
                pl.BlockSpec((1, vp), lambda bi, ti: (0, 0)),
            ],
            out_specs=pl.BlockSpec((1, tile, vp), lambda bi, ti: (bi, ti, 0)),
        ),
        compiler_params=pltpu.CompilerParams(
            dimension_semantics=("parallel", "parallel"),
        ),
    )(x, w, b)
    return out


# ----------------------------------------------------------------------------
# Main
# ----------------------------------------------------------------------------
if __name__ == "__main__":
    B, feat_in, T = 2, 128, 256
    num_classes = 28                 # vocab size excluding the CTC blank
    V = num_classes + 1

    key = jax.random.PRNGKey(0)
    kx, kw, kb = jax.random.split(key, 3)
    encoder_output = jax.random.normal(kx, (B, feat_in, T), jnp.float32)

    # xavier_uniform init of Conv1d(feat_in, V, kernel_size=1), as init_weights
    bound = math.sqrt(6.0 / (feat_in + V))
    weight = jax.random.uniform(kw, (V, feat_in, 1), jnp.float32, -bound, bound)
    bias = jax.random.uniform(kb, (V,), jnp.float32, -0.05, 0.05)

    out = jasper_decoder_forward(encoder_output, weight, bias)
    out = jax.block_until_ready(out)

    vp = _round_up(V, 128)
    assert out.shape == (B, T, vp), out.shape
    assert out.dtype == jnp.bfloat16

    # Pure-JAX reference check (same forward semantics as the PyTorch module).
    ref_logits = jnp.einsum("bct,vc->btv", encoder_output, weight[:, :, 0],
                            precision=jax.lax.Precision.HIGHEST) + bias
    ref = jax.nn.log_softmax(ref_logits, axis=-1)

    got = out[..., :V].astype(jnp.float32)       # slice only for the check
    assert bool(jnp.all(jnp.isfinite(got)))
    max_err = float(jnp.max(jnp.abs(got - ref)))
    # bf16 inputs + bf16 output store -> looser tolerance than an f32 run.
    assert bool(jnp.allclose(got, ref, atol=7e-2, rtol=5e-2)), max_err
    print("KERNEL_OK")
</pallas_src>

<mosaic_0001>
module attributes {stable_mosaic.version = 11 : i64} {
  func.func @_decoder_kernel(%arg0: i32, %arg1: i32, %arg2: memref<1x128x256xbf16, #tpu.memory_space<vmem>>, %arg3: memref<128x128xbf16, #tpu.memory_space<vmem>>, %arg4: memref<1x128xf32, #tpu.memory_space<vmem>>, %arg5: memref<1x256x128xbf16, #tpu.memory_space<vmem>>) attributes {dimension_semantics = [#tpu.dimension_semantics<parallel>, #tpu.dimension_semantics<parallel>], iteration_bounds = array<i64: 2, 1>, scalar_prefetch = 0 : i64, scratch_operands = 0 : i64, tpu.core_type = #tpu.core_type<tc>, window_params = [{transform_indices = @transform_0, window_bounds = array<i64: 1, 128, 256>}, {pipeline_mode = #tpu.pipeline_mode<synchronous>, transform_indices = @transform_1, window_bounds = array<i64: 128, 128>}, {pipeline_mode = #tpu.pipeline_mode<synchronous>, transform_indices = @transform_2, window_bounds = array<i64: 1, 128>}, {transform_indices = @transform_3, window_bounds = array<i64: 1, 256, 128>}]} {
    %c0 = arith.constant 0 : index
    %c0_0 = arith.constant 0 : index
    %c0_1 = arith.constant 0 : index
    %0 = vector.load %arg2[%c0, %c0_0, %c0_1] : memref<1x128x256xbf16, #tpu.memory_space<vmem>>, vector<1x128x256xbf16>
    %1 = vector.shape_cast %0 : vector<1x128x256xbf16> to vector<128x256xbf16>
    %c0_2 = arith.constant 0 : index
    %c0_3 = arith.constant 0 : index
    %2 = vector.load %arg3[%c0_2, %c0_3] : memref<128x128xbf16, #tpu.memory_space<vmem>>, vector<128x128xbf16>
    %cst = arith.constant dense<0.000000e+00> : vector<256x128xf32>
    %3 = tpu.matmul %1, %2, %cst {dimension_numbers = #tpu.dot_dimension_numbers<[0], [0], [1], [1], [0, 1, 1, 1], [], []>} : vector<128x256xbf16>, vector<128x128xbf16>, vector<256x128xf32> -> vector<256x128xf32>
    %c0_4 = arith.constant 0 : index
    %c0_5 = arith.constant 0 : index
    %4 = vector.load %arg4[%c0_4, %c0_5] : memref<1x128xf32, #tpu.memory_space<vmem>>, vector<1x128xf32>
    %5 = vector.broadcast %4 : vector<1x128xf32> to vector<256x128xf32>
    %6 = arith.addf %3, %5 : vector<256x128xf32>
    %cst_6 = arith.constant dense<0xFF800000> : vector<256xf32>
    %7 = vector.multi_reduction <maximumf>, %6, %cst_6 [1] : vector<256x128xf32> to vector<256xf32>
    %8 = vector.shape_cast %7 : vector<256xf32> to vector<256x1xf32>
    %9 = vector.broadcast %8 : vector<256x1xf32> to vector<256x128xf32>
    %10 = arith.subf %6, %9 : vector<256x128xf32>
    %11 = math.exp %10 : vector<256x128xf32>
    %cst_7 = arith.constant dense<0.000000e+00> : vector<256xf32>
    %12 = vector.multi_reduction <add>, %11, %cst_7 [1] : vector<256x128xf32> to vector<256xf32>
    %13 = vector.shape_cast %12 : vector<256xf32> to vector<256x1xf32>
    %14 = math.log %13 : vector<256x1xf32>
    %15 = vector.broadcast %14 : vector<256x1xf32> to vector<256x128xf32>
    %16 = arith.subf %10, %15 : vector<256x128xf32>
    %17 = arith.truncf %16 : vector<256x128xf32> to vector<256x128xbf16>
    %c0_8 = arith.constant 0 : index
    %c0_9 = arith.constant 0 : index
    %c0_10 = arith.constant 0 : index
    %18 = vector.load %arg5[%c0_8, %c0_9, %c0_10] : memref<1x256x128xbf16, #tpu.memory_space<vmem>>, vector<1x256x128xbf16>
    %19 = vector.shape_cast %18 : vector<1x256x128xbf16> to vector<256x128xbf16>
    %20 = vector.shape_cast %17 : vector<256x128xbf16> to vector<1x256x128xbf16>
    tpu.vector_store %arg5[%c0_8, %c0_9, %c0_10], %20 {strides = array<i32>} : memref<1x256x128xbf16, #tpu.memory_space<vmem>>, vector<1x256x128xbf16>,
    return
  }
  func.func @transform_0(%arg0: i32, %arg1: i32) -> (i32, i32, i32) {
    %c0_i32 = arith.constant 0 : i32
    %c0_i32_0 = arith.constant 0 : i32
    return %arg0, %c0_i32, %arg1 : i32, i32, i32
  }
  func.func @transform_1(%arg0: i32, %arg1: i32) -> (i32, i32) {
    %c0_i32 = arith.constant 0 : i32
    %c0_i32_0 = arith.constant 0 : i32
    %c0_i32_1 = arith.constant 0 : i32
    return %c0_i32, %c0_i32_0 : i32, i32
  }
  func.func @transform_2(%arg0: i32, %arg1: i32) -> (i32, i32) {
    %c0_i32 = arith.constant 0 : i32
    %c0_i32_0 = arith.constant 0 : i32
    %c0_i32_1 = arith.constant 0 : i32
    return %c0_i32, %c0_i32_0 : i32, i32
  }
  func.func @transform_3(%arg0: i32, %arg1: i32) -> (i32, i32, i32) {
    %c0_i32 = arith.constant 0 : i32
    %c0_i32_0 = arith.constant 0 : i32
    return %arg0, %arg1, %c0_i32 : i32, i32, i32
  }
}

</mosaic_0001>

<bundles_post_ra>
// kernel: tpu_custom_call.1
= control target key start
LH: loop header
LB: loop body
LE: loop exit
PB: predicated region body
PF: predicated region fallthrough
CT: control target
= control target key end

     0   :  { %8 = vsyncpa [#allocation3], 0  ;;  %s2436_s0 = inlined_call_operand.hbm [shape: bf16[2,128,256], index: 0, kind: input, shape index: {}]   ;;  %s2437_s1 = inlined_call_operand.hbm [shape: bf16[128,128], index: 1, kind: input, shape index: {}]   ;;  %s2438_s2 = inlined_call_operand.vmem [shape: f32[1,128], index: 2, kind: input, shape index: {}]   ;;  %s2439_s3 = inlined_call_operand.hbm [shape: bf16[2,256,128], index: 3, kind: output, shape index: {}]  }
   0x1   :  { %10 = vsyncpa [#allocation3 + $0x1], 0 }
   0x2   :  { %11 = vsyncpa [#allocation6], 0 }
   0x3   :  { %12 = vsyncpa [#allocation4], 0 }
   0x4   :  { %14 = vsyncpa [#allocation4 + $0x1], 0  ;;  %s1883_s12 = smov 0   ;;  %s1885_s13 = smov 0  }
   0x5   :  { %s1887_s14 = smov 0   ;;  %s1889_s15 = smov 0  }
   0x6   :  { %s1891_s16 = smov 0   ;;  %s1893_s17 = smov 0  }
   0x7 LB: > { %s1178_s18 = sadd.s32 4294967295, %s1852_s17   ;;  %s1179_s19 = sadd.s32 4294967294, %s1852_s17   ;;  %s1852_s17 = sphi %s1893_s17, %s20_s17   ;;  %s1848_s16 = sphi %s1891_s16, %s2463_s16   ;;  %s1844_s15 = sphi %s1889_s15, %s2462_s15   ;;  %s1840_s14 = sphi %s1887_s14, %s2461_s14   ;;  %s1836_s13 = sphi %s1885_s13, %s2460_s13   ;;  %s1832_s12 = sphi %s1883_s12, %s2459_s12  }
   0x8   : > { %p54_p0 = scmp.ne.s32.totalorder %s1836_s13, %s1832_s12  ;;  %p1917_p1 = scmp.eq.s32.totalorder %s1178_s18, 0 }
   0x9   : > { %p1921_p2 = scmp.eq.s32.totalorder %s1178_s18, 1  ;;  %p128_p3 = scmp.eq.s32.totalorder %s1179_s19, 1 }
   0xa   : > { %s2444_s20 = scalar_select %p1917_p1, 1, 0 }
   0xb   : > { %s2445_s21 = scalar_select %p1921_p2, 1, 0 }
   0xc   : > { %p1927_p4 = por %p1917_p1, %p54_p0  ;;  %p1180_p5 = scmp.ge.s32.totalorder %s1852_s17, 1 }
   0xd   : > { %p1932_p6 = por %p128_p3, %p54_p0  ;;  %p135_p7 = scmp.lt.s32.totalorder %s1852_s17, 3 }
   0xe   : > { %s2446_s22 = scalar_select %p1927_p4, 1, 0 }
   0xf   : > { %s2447_s23 = scalar_select %p1932_p6, 1, 0 }
  0x10   : > { %p1937_p8 = pnand %p1180_p5, %p135_p7  ;;  %s1854_s25 = smov [#allocation5]  }
  0x11   : > { %s147_s26 = sshll.u32 %s1854_s25, 4  ;;  %s32_s28 = sadd.s32 1, %s1848_s16  ;;  %s148_s26 = int_to_ptr.vmem [resolvable:$true] %s147_s26 }
  0x12   : > { %s2448_s24 = scalar_select %p1937_p8, 1, 0 }
  0x13   : > { %p1477_p9 = pneg %p1937_p8  ;;  %s1708_s4 = scalar_lea.hbm %s2437_s1, 1024 }
  0x14   : > { %p1709_p12 = scmp.ne.s32.totalorder %s2437_s1, %s1708_s4  ;;  %p1715_p5 = scmp.lt.u32.totalorder %s1708_s4, %s2437_s1 }
  0x15   : > { %p1946_p11 = pnand %p1477_p9, %p1917_p1 }
  0x17   : > { %p1710_p13 = pneg %p1946_p11 }
  0x19   : > { %p1711_p0 = pnand %p1710_p13, %p1709_p12 }
  0x1b   : > { %p1712_p3 = pneg %p1711_p0 }
  0x1d   : > { %p1717_p7 = pnand %p1715_p5, %p1712_p3 }
  0x1f   : > { %1720 = shalt.err (!%p1717_p7)
}
  0x20   : > { %s1721_s9 = scalar_lea.vmem %s148_s26, 1024  ;;  %p1729_p1 = scmp.lt.s32.totalorder %s148_s26, %s148_s26 }
  0x21   : > { %p1722_p9 = scmp.ne.s32.totalorder %s148_s26, %s1721_s9  ;;  %p1730_p4 = scmp.lt.s32.totalorder %s1721_s9, %s1721_s9 }
  0x23   : > { %p1724_p10 = pnand %p1722_p9, %p1710_p13  ;;  %p1731_p8 = por %p1730_p4, %p1729_p1 }
  0x25   : > { %p1725_p6 = pneg %p1724_p10 }
  0x27   : > { %p1732_p2 = pnand %p1731_p8, %p1725_p6 }
  0x29   : > { %1735 = shalt.err (!%p1732_p2)
}
  0x2a   : > { %s1855_s10 = smov 64   ;;  %s1856_s11 = smov 4  }
  0x2b   : > { %1480 = dma.hbm_to_vmem [thread:$0]  (!%p1946_p11), %s2437_s1, 1024, %s148_s26, [#allocation6], %s1855_s10, %s1855_s10, %s1856_s11  }
  0x2c   : > { %p34_p1 = scmp.ge.s32.totalorder %s32_s28, 2  ;;  %s41_s25 = sadd.s32 1, %s1840_s14 }
  0x2d   : > { %p48_p2 = scmp.ne.s32.totalorder %s1840_s14, %s1836_s13  ;;  %p49_p4 = scmp.eq.s32.totalorder %s1852_s17, 0 }
  0x2e   : > { %s2465_s28 = smov (%p34_p1, %s32_s28), 0  ;;  %p2451_p8 = scmp.ne.s32.totalorder %s2445_s21, 0 }
  0x2f   : > { %p1973_p6 = por %p49_p4, %p48_p2  ;;  %s36_s27 = ssub.s32 %s1848_s16, %s2465_s28 }
  0x30   : > { %p1979_p10 = por %p2451_p8, %p48_p2  ;;  %p1490_p12 = scmp.lt.s32.totalorder %s1852_s17, 2 }
  0x31   : > { %p39_p11 = scmp.eq.s32.totalorder %s36_s27, 0  ;;  %s164_s26 = sand.u32 1, %s1840_s14  }
  0x32   : > { %s1183_s4 = sshll.u32 %s164_s26, 7  ;;  %s1252_s6 = sshll.u32 %s1848_s16, 11 }
  0x33   : > { %s1988_s5 = scalar_select %p39_p11, %s1840_s14, %s41_s25  }
  0x34   : > { %s1994_s9 = scalar_lea.hbm %s2436_s0, %s1252_s6  ;;  %s168_s21 = scalar_lea.vmem [#allocation2], %s1183_s4 }
  0x35   : > { %s177_s10 = sshll.u32 %s168_s21, 4  ;;  %p2000_p13 = pnand %p1490_p12, %p1973_p6  ;;  %s1996_s10 = int_to_ptr.vmem [resolvable:$true] %s177_s10 }
  0x36   : > { %s2004_s18 = scalar_lea.sflag [#allocation3], %s164_s26  ;;  %s1736_s19 = scalar_lea.hbm %s1994_s9, 2048 }
  0x37   : > { %p1737_p0 = scmp.ne.s32.totalorder %s1994_s9, %s1736_s19  ;;  %p1738_p3 = pneg %p2000_p13 }
  0x38   : > { %s1741_s29 = scalar_lea.hbm %s2436_s0, 4096  ;;  %p1742_p9 = scmp.lt.u32.totalorder %s1994_s9, %s2436_s0 }
  0x39   : > { %p1739_p5 = pnand %p1738_p3, %p1737_p0  ;;  %p1743_p1 = scmp.lt.u32.totalorder %s1741_s29, %s1736_s19 }
  0x3a   : > { %p1745_p4 = scmp.lt.u32.totalorder %s1736_s19, %s1994_s9 }
  0x3b   : > { %p1740_p7 = pneg %p1739_p5  ;;  %p1744_p2 = por %p1743_p1, %p1742_p9 }
  0x3d   : > { %p1746_p6 = por %p1745_p4, %p1744_p2 }
  0x3f   : > { %p1747_p8 = pnand %p1746_p6, %p1740_p7 }
  0x41   : > { %1750 = shalt.err (!%p1747_p8)
}
  0x42   : > { %s1751_s26 = scalar_lea.vmem %s1996_s10, 2048  ;;  %s1857_s7 = smov [#allocation2]  }
  0x43   : > { %p1752_p12 = scmp.ne.s32.totalorder %s1996_s10, %s1751_s26  ;;  %s1756_s8 = sshll.u32 %s1857_s7, 4  ;;  %s1757_s8 = int_to_ptr.vmem [resolvable:$false] %s1756_s8 }
  0x44   : > { %s1758_s21 = scalar_lea.vmem %s1757_s8, 4096  ;;  %p1759_p5 = scmp.lt.s32.totalorder %s1996_s10, %s1757_s8 }
  0x45   : > { %p1754_p11 = pnand %p1752_p12, %p1738_p3  ;;  %p1760_p9 = scmp.lt.s32.totalorder %s1758_s21, %s1751_s26 }
  0x47   : > { %p1755_p0 = pneg %p1754_p11  ;;  %p1761_p1 = por %p1760_p9, %p1759_p5 }
  0x49   : > { %p1762_p2 = pnand %p1761_p1, %p1755_p0 }
  0x4b   : > { %1765 = shalt.err (!%p1762_p2)
}
  0x4c   : > { %s1858_s19 = smov 128   ;;  %s1859_s25 = smov 8  }
  0x4d   : > { %1484 = dma.hbm_to_vmem [thread:$0]  (!%p2000_p13), %s1994_s9, 2048, %s1996_s10, %s2004_s18, %s1858_s19, %s1858_s19, %s1859_s25  }
  0x4e   : > { %p2454_p3 = scmp.ne.s32.totalorder %s2448_s24, 0 }
  0x4f   : > { %s2035_s27 = sand.u32 (!%p2454_p3), 1, %s1836_s13   ;;  %p2455_p7 = scmp.ne.s32.totalorder (!%p2454_p3), %s2446_s22, 0 }
  0x50   : > { %189 = sbr.rel (%p2454_p3) target bundleno = 806 (0x326), region = 32  ;;  %s1187_s29 = sshll.u32 (!%p2454_p3), %s2035_s27, 7 }
  0x51   : > { %s192_s4 = scalar_lea.sflag (!%p2454_p3), [#allocation3], %s2035_s27  ;;  %s2041_s6 = scalar_lea.vmem (!%p2454_p3), [#allocation2], %s1187_s29 }
  0x57   : > { %1819 = dma.done.wait (%p2455_p7), %s192_s4, 2048  }
  0x58   : > { %1821 = vsyncadd (%p2455_p7), %s192_s4, 4294965248  ;;  %p2456_p13 = scmp.ne.s32.totalorder %s2444_s20, 0 }
  0x5a   : > { %1823 = dma.done.wait (%p2456_p13), [#allocation6], 1024  }
  0x5b   : > { %1825 = vsyncadd (%p2456_p13), [#allocation6], 4294966272  ;;  %v1548_v0 = vld [vmem:[%s2041_s6] ss:$8 sps:$4 sm:$0xff]   ;;  %v1550_v1 = vld [vmem:[%s2041_s6 + $0x4] ss:$8 sps:$4 sm:$0xff]  }
  0x5c   : > { %344 = vxpose.xlu0.c.b16.start [1/8] %v1548_v0, 128  ;;  %v1551_v2 = vld [vmem:[%s2041_s6 + $0x10] ss:$8 sps:$4 sm:$0xff]   ;;  %360 = vxpose.xlu1.c.b16.start [1/8] %v1550_v1, 128  ;;  %v1553_v3 = vld [vmem:[%s2041_s6 + $0x14] ss:$8 sps:$4 sm:$0xff]   ;;  %v1554_v4 = vld [vmem:[%s2041_s6 + $0x20] ss:$8 sps:$4 sm:$0xff]  }
  0x5d   : > { %v1556_v5 = vld [vmem:[%s2041_s6 + $0x24] ss:$8 sps:$4 sm:$0xff]   ;;  %v1557_v6 = vld [vmem:[%s2041_s6 + $0x30] ss:$8 sps:$4 sm:$0xff]   ;;  %v1559_v7 = vld [vmem:[%s2041_s6 + $0x34] ss:$8 sps:$4 sm:$0xff]  }
  0x5e   : > { %v1572_v8 = vld [vmem:[#allocation5] sm:$0xff]   ;;  %v1573_v9 = vld [vmem:[#allocation5 + $0x8] sm:$0xff]   ;;  %v1574_v12 = vld [vmem:[#allocation5 + $0x10] sm:$0xff]   ;;  %s2332_s24 = scalar_lea.vmem [#allocation7], %s1187_s29  ;;  %s1285_s9 = sshll.u32 %s1844_s15, 11 }
  0x5f   : > { %1405 = vmatprep.subr.bf16.mxu0 %v1572_v8  ;;  %1453 = vmatprep.subr.bf16.mxu1 %v1572_v8  ;;  %v1560_v10 = vld [vmem:[%s2041_s6 + $0x40] ss:$8 sps:$4 sm:$0xff]   ;;  %v1562_v11 = vld [vmem:[%s2041_s6 + $0x44] ss:$8 sps:$4 sm:$0xff]   ;;  %v1563_v13 = vld [vmem:[%s2041_s6 + $0x50] ss:$8 sps:$4 sm:$0xff]   ;;  %s2384_s26 = scalar_lea.hbm %s2439_s3, %s1285_s9 }
  0x60   : > { %345 = vxpose.xlu0.c.b16.cont [2/8] %v1551_v2, 128  ;;  %361 = vxpose.xlu1.c.b16.cont [2/8] %v1553_v3, 128  ;;  %v1565_v14 = vld [vmem:[%s2041_s6 + $0x54] ss:$8 sps:$4 sm:$0xff]   ;;  %v1566_v16 = vld [vmem:[%s2041_s6 + $0x60] ss:$8 sps:$4 sm:$0xff]   ;;  %v1568_v17 = vld [vmem:[%s2041_s6 + $0x64] ss:$8 sps:$4 sm:$0xff]  }
  0x61   : > { %1406 = vmatpush3.bf16.msra.mxu0 %v1572_v8  ;;  %1461 = vmatpush3.bf16.msra.mxu1 %v1572_v8  ;;  %v1575_v15 = vld [vmem:[#allocation5 + $0x18] sm:$0xff]   ;;  %v1576_v18 = vld [vmem:[#allocation5 + $0x20] sm:$0xff]   ;;  %v1577_v21 = vld [vmem:[#allocation5 + $0x28] sm:$0xff]   ;;  %s1081_s10 = sshll.u32 %s2332_s24, 4  ;;  %s1066_s7 = scalar_lea.sflag [#allocation4], %s2035_s27  ;;  %s2386_s10 = int_to_ptr.vmem [resolvable:$true] %s1081_s10 }
  0x62   : > { %1407 = vmatprep.subr.bf16.mxu0 %v1573_v9  ;;  %1454 = vmatprep.subr.bf16.mxu1 %v1573_v9  ;;  %v1569_v19 = vld [vmem:[%s2041_s6 + $0x70] ss:$8 sps:$4 sm:$0xff]   ;;  %v1571_v20 = vld [vmem:[%s2041_s6 + $0x74] ss:$8 sps:$4 sm:$0xff]   ;;  %v2070_v40 = vld [vmem:[%s2438_s2] ss:$0 sm:$0xff] }
  0x63   : > { %v1578_v22 = vld [vmem:[#allocation5 + $0x30] sm:$0xff]   ;;  %v1579_v23 = vld [vmem:[#allocation5 + $0x38] sm:$0xff]   ;;  %s1766_s15 = scalar_lea.vmem %s2386_s10, 2048  ;;  %s1860_s8 = smov [#allocation7]  }
  0x64   : > { %346 = vxpose.xlu0.c.b16.cont [3/8] %v1554_v4, 128  ;;  %362 = vxpose.xlu1.c.b16.cont [3/8] %v1556_v5, 128  ;;  %p1767_p4 = scmp.ne.s32.totalorder %s2386_s10, %s1766_s15  ;;  %s1770_s21 = sshll.u32 %s1860_s8, 4  ;;  %s1771_s21 = int_to_ptr.vmem [resolvable:$false] %s1770_s21 }
  0x65   : > { %1408 = vmatpush3.bf16.msra.mxu0 %v1573_v9  ;;  %1462 = vmatpush3.bf16.msra.mxu1 %v1573_v9  ;;  %s1772_s19 = scalar_lea.vmem %s1771_s21, 4096  ;;  %p1773_p12 = scmp.lt.s32.totalorder %s2386_s10, %s1771_s21 }
  0x66   : > { %1409 = vmatprep.subr.bf16.mxu0 %v1574_v12  ;;  %1455 = vmatprep.subr.bf16.mxu1 %v1574_v12  ;;  %p1768_p6 = pnand %p1767_p4, %p1979_p10  ;;  %p1774_p11 = scmp.lt.s32.totalorder %s1772_s19, %s1766_s15 }
  0x68   : > { %347 = vxpose.xlu0.c.b16.cont [4/8] %v1557_v6, 128  ;;  %363 = vxpose.xlu1.c.b16.cont [4/8] %v1559_v7, 128  ;;  %p1769_p8 = pneg %p1768_p6  ;;  %p1775_p0 = por %p1774_p11, %p1773_p12 }
  0x69   : > { %1410 = vmatpush3.bf16.msra.mxu0 %v1574_v12  ;;  %1463 = vmatpush3.bf16.msra.mxu1 %v1574_v12 }
  0x6a   : > { %1411 = vmatprep.subr.bf16.mxu0 %v1575_v15  ;;  %1456 = vmatprep.subr.bf16.mxu1 %v1575_v15  ;;  %p1776_p5 = pnand %p1775_p0, %p1769_p8 }
  0x6c   : > { %348 = vxpose.xlu0.c.b16.cont [5/8] %v1560_v10, 128  ;;  %364 = vxpose.xlu1.c.b16.cont [5/8] %v1562_v11, 128 }
  0x6d   : > { %1412 = vmatpush3.bf16.msra.mxu0 %v1575_v15  ;;  %1464 = vmatpush3.bf16.msra.mxu1 %v1575_v15 }
  0x6e   : > { %1413 = vmatprep.subr.bf16.mxu0 %v1576_v18  ;;  %1457 = vmatprep.subr.bf16.mxu1 %v1576_v18 }
  0x70   : > { %349 = vxpose.xlu0.c.b16.cont [6/8] %v1563_v13, 128  ;;  %365 = vxpose.xlu1.c.b16.cont [6/8] %v1565_v14, 128 }
  0x71   : > { %1414 = vmatpush3.bf16.msra.mxu0 %v1576_v18  ;;  %1465 = vmatpush3.bf16.msra.mxu1 %v1576_v18 }
  0x72   : > { %1415 = vmatprep.subr.bf16.mxu0 %v1577_v21  ;;  %1458 = vmatprep.subr.bf16.mxu1 %v1577_v21 }
  0x74   : > { %350 = vxpose.xlu0.c.b16.cont [7/8] %v1566_v16, 128  ;;  %366 = vxpose.xlu1.c.b16.cont [7/8] %v1568_v17, 128 }
  0x75   : > { %1416 = vmatpush3.bf16.msra.mxu0 %v1577_v21  ;;  %1466 = vmatpush3.bf16.msra.mxu1 %v1577_v21 }
  0x76   : > { %1417 = vmatprep.subr.bf16.mxu0 %v1578_v22  ;;  %1459 = vmatprep.subr.bf16.mxu1 %v1578_v22 }
  0x78   : > { %351 = vxpose.xlu0.c.b16.end [8/8] %v1569_v19, 128  ;;  %367 = vxpose.xlu1.c.b16.end [8/8] %v1571_v20, 128 }
  0x79   : > { %1418 = vmatpush3.bf16.msra.mxu0 %v1578_v22  ;;  %1467 = vmatpush3.bf16.msra.mxu1 %v1578_v22 }
  0x7a   : > { %1419 = vmatprep.subr.bf16.mxu0 %v1579_v23  ;;  %1460 = vmatprep.subr.bf16.mxu1 %v1579_v23 }
  0x7d   : > { %1420 = vmatpush3.bf16.msra.mxu0 %v1579_v23  ;;  %1468 = vmatpush3.bf16.msra.mxu1 %v1579_v23 }
  0xc2   : > { %v352_v24 = vpop.trf.xlu0  ;;  %v368_v25 = vpop.trf.xlu1 }
  0xc3   : > { %1421 = vmatprep.mubr.bf16.mxu0 %v352_v24  ;;  %1437 = vmatprep.mubr.bf16.mxu1 %v368_v25 }
  0xc6   : > { %v353_v26 = vpop.trf.xlu0  ;;  %v369_v27 = vpop.trf.xlu1 }
  0xc7   : > { %1422 = vmatmul.mubr.bf16.vlgmr.msra.gmra.mrb[0].mxu0 %v353_v26  ;;  %1438 = vmatmul.mubr.bf16.vlgmr.msra.gmra.mrb[0].mxu1 %v369_v27 }
  0xca   : > { %v354_v28 = vpop.trf.xlu0  ;;  %v370_v29 = vpop.trf.xlu1 }
  0xcb   : > { %1425 = vmatprep.mubr.bf16.mxu0 %v354_v28  ;;  %1441 = vmatprep.mubr.bf16.mxu1 %v370_v29 }
  0xce   : > { %v355_v30 = vpop.trf.xlu0  ;;  %v371_v31 = vpop.trf.xlu1 }
  0xcf   : > { %1426 = vmatmul.mubr.bf16.gmra.mrb[4].mxu0 %v355_v30  ;;  %1442 = vmatmul.mubr.bf16.gmra.mrb[4].mxu1 %v371_v31 }
  0xd2   : > { %v356_v32 = vpop.trf.xlu0  ;;  %v372_v33 = vpop.trf.xlu1 }
  0xd3   : > { %1429 = vmatprep.mubr.bf16.mxu0 %v356_v32  ;;  %1445 = vmatprep.mubr.bf16.mxu1 %v372_v33 }
  0xd6   : > { %v357_v34 = vpop.trf.xlu0  ;;  %v373_v35 = vpop.trf.xlu1 }
  0xd7   : > { %1430 = vmatmul.mubr.bf16.gmra.mrb[8].mxu0 %v357_v34  ;;  %1446 = vmatmul.mubr.bf16.gmra.mrb[8].mxu1 %v373_v35 }
  0xda   : > { %v358_v36 = vpop.trf.xlu0  ;;  %v374_v37 = vpop.trf.xlu1 }
  0xdb   : > { %1433 = vmatprep.mubr.bf16.mxu0 %v358_v36  ;;  %1449 = vmatprep.mubr.bf16.mxu1 %v374_v37 }
  0xde   : > { %v359_v38 = vpop.trf.xlu0  ;;  %v375_v39 = vpop.trf.xlu1 }
  0xdf   : > { %1434 = vmatmul.mubr.bf16.gmra.mrb[12].mxu0 %v359_v38  ;;  %1450 = vmatmul.mubr.bf16.gmra.mrb[12].mxu1 %v375_v39 }
 0x19a   : > { %v1423_v41 = vpop.f32.mrb[0].mxu0  ;;  %v1439_v44 = vpop.f32.mrb[0].mxu1 }
 0x19b   : > { %v2073_v42 = vadd.f32 %v1423_v41, %v2070_v40  ;;  %v458_v43 = vpop.f32.mrb[1].mxu0  ;;  %v522_v46 = vpop.f32.mrb[1].mxu1  ;;  %v2076_v47 = vadd.f32 %v1439_v44, %v2070_v40 }
 0x19c   : > { %v1424_v45 = vpop.f32.mrb[2].mxu0  ;;  %v1440_v49 = vpop.f32.mrb[2].mxu1  ;;  %v2088_v54 = vadd.f32 %v2070_v40, %v458_v43  ;;  %v2096_v63 = vadd.f32 %v2070_v40, %v522_v46 }
 0x19d   : > { %v2079_v48 = vadd.f32 %v1424_v45, %v2070_v40  ;;  %589 = vmax.xlane.f32.xlu0 %v2073_v42  ;;  %v461_v50 = vpop.f32.mrb[3].mxu0  ;;  %v525_v51 = vpop.f32.mrb[3].mxu1  ;;  %v2084_v52 = vadd.f32 %v1440_v49, %v2070_v40 }
 0x19e   : > { %v2092_v59 = vadd.f32 %v2070_v40, %v461_v50  ;;  %v2100_v0 = vadd.f32 %v2070_v40, %v525_v51 }
 0x19f   : > { %591 = vmax.xlane.f32.xlu1 %v2079_v48 }
 0x1a1   : > { %621 = vmax.xlane.f32.xlu0 %v2076_v47 }
 0x1a2   : > { %v1427_v53 = vpop.f32.mrb[4].mxu0  ;;  %v1443_v56 = vpop.f32.mrb[4].mxu1 }
 0x1a3   : > { %623 = vmax.xlane.f32.xlu1 %v2084_v52  ;;  %v474_v55 = vpop.f32.mrb[5].mxu0  ;;  %v538_v58 = vpop.f32.mrb[5].mxu1  ;;  %v2103_v1 = vadd.f32 %v1427_v53, %v2070_v40  ;;  %v2111_v8 = vadd.f32 %v1443_v56, %v2070_v40 }
 0x1a4   : > { %v1428_v57 = vpop.f32.mrb[6].mxu0  ;;  %v1444_v61 = vpop.f32.mrb[6].mxu1  ;;  %v2120_v14 = vadd.f32 %v2070_v40, %v474_v55  ;;  %v2128_v23 = vadd.f32 %v2070_v40, %v538_v58 }
 0x1a5   : > { %585 = vmax.xlane.f32.xlu0 %v2088_v54  ;;  %v477_v60 = vpop.f32.mrb[7].mxu0  ;;  %v541_v62 = vpop.f32.mrb[7].mxu1  ;;  %v2108_v7 = vadd.f32 %v1428_v57, %v2070_v40  ;;  %v2116_v12 = vadd.f32 %v1444_v61, %v2070_v40 }
 0x1a6   : > { %v2124_v19 = vadd.f32 %v2070_v40, %v477_v60  ;;  %v2132_v24 = vadd.f32 %v2070_v40, %v541_v62 }
 0x1a7   : > { %587 = vmax.xlane.f32.xlu1 %v2092_v59 }
 0x1a9   : > { %617 = vmax.xlane.f32.xlu0 %v2096_v63 }
 0x1aa   : > { %v1431_v2 = vpop.f32.mrb[8].mxu0  ;;  %v1447_v4 = vpop.f32.mrb[8].mxu1 }
 0x1ab   : > { %619 = vmax.xlane.f32.xlu1 %v2100_v0  ;;  %v490_v3 = vpop.f32.mrb[9].mxu0  ;;  %v554_v6 = vpop.f32.mrb[9].mxu1  ;;  %v2135_v25 = vadd.f32 %v1431_v2, %v2070_v40  ;;  %v2143_v27 = vadd.f32 %v1447_v4, %v2070_v40 }
 0x1ac   : > { %v1432_v5 = vpop.f32.mrb[10].mxu0  ;;  %v1448_v10 = vpop.f32.mrb[10].mxu1  ;;  %v2152_v29 = vadd.f32 %v2070_v40, %v490_v3  ;;  %v2160_v31 = vadd.f32 %v2070_v40, %v554_v6 }
 0x1ad   : > { %597 = vmax.xlane.f32.xlu0 %v2103_v1  ;;  %v493_v9 = vpop.f32.mrb[11].mxu0  ;;  %v557_v11 = vpop.f32.mrb[11].mxu1  ;;  %v2140_v26 = vadd.f32 %v1432_v5, %v2070_v40  ;;  %v2148_v28 = vadd.f32 %v1448_v10, %v2070_v40 }
 0x1ae   : > { %v2156_v30 = vadd.f32 %v2070_v40, %v493_v9  ;;  %v2164_v32 = vadd.f32 %v2070_v40, %v557_v11 }
 0x1af   : > { %599 = vmax.xlane.f32.xlu1 %v2108_v7 }
 0x1b1   : > { %629 = vmax.xlane.f32.xlu0 %v2111_v8 }
 0x1b2   : > { %v1435_v13 = vpop.f32.mrb[12].mxu0  ;;  %v1451_v16 = vpop.f32.mrb[12].mxu1 }
 0x1b3   : > { %631 = vmax.xlane.f32.xlu1 %v2116_v12  ;;  %v506_v15 = vpop.f32.mrb[13].mxu0  ;;  %v570_v18 = vpop.f32.mrb[13].mxu1  ;;  %v2167_v33 = vadd.f32 %v1435_v13, %v2070_v40  ;;  %v2192_v39 = vadd.f32 %v1451_v16, %v2070_v40 }
 0x1b4   : > { %v1436_v17 = vpop.f32.mrb[14].mxu0  ;;  %v1452_v21 = vpop.f32.mrb[14].mxu1  ;;  %v2176_v35 = vadd.f32 %v2070_v40, %v506_v15  ;;  %v2183_v37 = vadd.f32 %v2070_v40, %v570_v18 }
 0x1b5   : > { %593 = vmax.xlane.f32.xlu0 %v2120_v14  ;;  %v509_v20 = vpop.f32.mrb[15].mxu0  ;;  %v573_v22 = vpop.f32.mrb[15].mxu1  ;;  %v2172_v34 = vadd.f32 %v1436_v17, %v2070_v40  ;;  %v2196_v41 = vadd.f32 %v1452_v21, %v2070_v40 }
 0x1b6   : > { %v2180_v36 = vadd.f32 %v2070_v40, %v509_v20  ;;  %v2188_v38 = vadd.f32 %v2070_v40, %v573_v22 }
 0x1b7   : > { %595 = vmax.xlane.f32.xlu1 %v2124_v19 }
 0x1b9   : > { %625 = vmax.xlane.f32.xlu0 %v2128_v23 }
 0x1bb   : > { %627 = vmax.xlane.f32.xlu1 %v2132_v24 }
 0x1bd   : > { %605 = vmax.xlane.f32.xlu0 %v2135_v25 }
 0x1bf   : > { %607 = vmax.xlane.f32.xlu1 %v2140_v26 }
 0x1c1   : > { %637 = vmax.xlane.f32.xlu0 %v2143_v27 }
 0x1c3   : > { %639 = vmax.xlane.f32.xlu1 %v2148_v28 }
 0x1c5   : > { %601 = vmax.xlane.f32.xlu0 %v2152_v29 }
 0x1c7   : > { %603 = vmax.xlane.f32.xlu1 %v2156_v30 }
 0x1c9   : > { %633 = vmax.xlane.f32.xlu0 %v2160_v31 }
 0x1cb   : > { %635 = vmax.xlane.f32.xlu1 %v2164_v32 }
 0x1cd   : > { %613 = vmax.xlane.f32.xlu0 %v2167_v33 }
 0x1cf   : > { %615 = vmax.xlane.f32.xlu1 %v2172_v34 }
 0x1d1   : > { %609 = vmax.xlane.f32.xlu0 %v2176_v35 }
 0x1d3   : > { %611 = vmax.xlane.f32.xlu1 %v2180_v36 }
 0x1d5   : > { %641 = vmax.xlane.f32.xlu0 %v2183_v37 }
 0x1d7   : > { %643 = vmax.xlane.f32.xlu1 %v2188_v38 }
 0x1d9   : > { %645 = vmax.xlane.f32.xlu0 %v2192_v39 }
 0x1db   : > { %647 = vmax.xlane.f32.xlu1 %v2196_v41 }
 0x22a   : > { %v590_v43 = vpop.xlane.xlu0 %589 }
 0x22b   : > { %v2201_v44 = vsub.f32 %v2073_v42, %v590_v43 }
 0x22c   : > { %v592_v45 = vpop.xlane.xlu1 %591 }
 0x22d   : > { %v685_v46 = vmul.f32 1.442695, %v2201_v44  ;;  %v2205_v49 = vsub.f32 %v2079_v48, %v592_v45 }
 0x22e   : > { %v622_v50 = vpop.xlane.xlu0 %621 }
 0x22f   : > { %1580 = vpow2.f32 %v685_v46  ;;  %v687_v51 = vmul.f32 1.442695, %v2205_v49  ;;  %v2209_v40 = vsub.f32 %v2076_v47, %v622_v50 }
 0x230   : > { %v624_v53 = vpop.xlane.xlu1 %623 }
 0x231   : > { %1582 = vpow2.f32 %v687_v51  ;;  %v717_v55 = vmul.f32 1.442695, %v2209_v40  ;;  %v2213_v42 = vsub.f32 %v2084_v52, %v624_v53 }
 0x232   : > { %v586_v56 = vpop.xlane.xlu0 %585 }
 0x233   : > { %1584 = vpow2.f32 %v717_v55  ;;  %v719_v57 = vmul.f32 1.442695, %v2213_v42  ;;  %v2217_v48 = vsub.f32 %v2088_v54, %v586_v56 }
 0x234   : > { %v588_v58 = vpop.xlane.xlu1 %587 }
 0x235   : > { %1586 = vpow2.f32 %v719_v57  ;;  %v681_v60 = vmul.f32 1.442695, %v2217_v48  ;;  %v2221_v47 = vsub.f32 %v2092_v59, %v588_v58 }
 0x236   : > { %v618_v61 = vpop.xlane.xlu0 %617 }
 0x237   : > { %1588 = vpow2.f32 %v681_v60  ;;  %v683_v62 = vmul.f32 1.442695, %v2221_v47  ;;  %v2225_v52 = vsub.f32 %v2096_v63, %v618_v61 }
 0x238   : > { %v620_v2 = vpop.xlane.xlu1 %619 }
 0x239   : > { %v1581_v3 = vpop.eup %1580  ;;  %1590 = vpow2.f32 %v683_v62  ;;  %v713_v54 = vmul.f32 1.442695, %v2225_v52  ;;  %v2229_v4 = vsub.f32 %v2100_v0, %v620_v2 }
 0x23a   : > { %749 = vadd.xlane.f32.xlu0 %v1581_v3  ;;  %v598_v5 = vpop.xlane.xlu0 %597 }
 0x23b   : > { %v1583_v6 = vpop.eup %1582  ;;  %1592 = vpow2.f32 %v713_v54  ;;  %v715_v59 = vmul.f32 1.442695, %v2229_v4  ;;  %v2233_v9 = vsub.f32 %v2103_v1, %v598_v5 }
 0x23c   : > { %v600_v10 = vpop.xlane.xlu1 %599  ;;  %751 = vadd.xlane.f32.xlu1 %v1583_v6 }
 0x23d   : > { %v1585_v63 = vpop.eup %1584  ;;  %1594 = vpow2.f32 %v715_v59  ;;  %v693_v11 = vmul.f32 1.442695, %v2233_v9  ;;  %v2237_v13 = vsub.f32 %v2108_v7, %v600_v10 }
 0x23e   : > { %781 = vadd.xlane.f32.xlu0 %v1585_v63  ;;  %v630_v0 = vpop.xlane.xlu0 %629 }
 0x23f   : > { %v1587_v15 = vpop.eup %1586  ;;  %1596 = vpow2.f32 %v693_v11  ;;  %v695_v16 = vmul.f32 1.442695, %v2237_v13  ;;  %v2241_v17 = vsub.f32 %v2111_v8, %v630_v0 }
 0x240   : > { %v632_v1 = vpop.xlane.xlu1 %631  ;;  %783 = vadd.xlane.f32.xlu1 %v1587_v15 }
 0x241   : > { %v1589_v18 = vpop.eup %1588  ;;  %1598 = vpow2.f32 %v695_v16  ;;  %v725_v20 = vmul.f32 1.442695, %v2241_v17  ;;  %v2245_v21 = vsub.f32 %v2116_v12, %v632_v1 }
 0x242   : > { %745 = vadd.xlane.f32.xlu0 %v1589_v18  ;;  %v594_v7 = vpop.xlane.xlu0 %593 }
 0x243   : > { %v1591_v22 = vpop.eup %1590  ;;  %1600 = vpow2.f32 %v725_v20  ;;  %v727_v43 = vmul.f32 1.442695, %v2245_v21  ;;  %v2249_v45 = vsub.f32 %v2120_v14, %v594_v7 }
 0x244   : > { %v596_v8 = vpop.xlane.xlu1 %595  ;;  %747 = vadd.xlane.f32.xlu1 %v1591_v22 }
 0x245   : > { %v1593_v46 = vpop.eup %1592  ;;  %1602 = vpow2.f32 %v727_v43  ;;  %v689_v50 = vmul.f32 1.442695, %v2249_v45  ;;  %v2253_v51 = vsub.f32 %v2124_v19, %v596_v8 }
 0x246   : > { %777 = vadd.xlane.f32.xlu0 %v1593_v46  ;;  %v626_v12 = vpop.xlane.xlu0 %625 }
 0x247   : > { %v1595_v53 = vpop.eup %1594  ;;  %1604 = vpow2.f32 %v689_v50  ;;  %v691_v55 = vmul.f32 1.442695, %v2253_v51  ;;  %v2257_v56 = vsub.f32 %v2128_v23, %v626_v12 }
 0x248   : > { %v628_v14 = vpop.xlane.xlu1 %627  ;;  %779 = vadd.xlane.f32.xlu1 %v1595_v53 }
 0x249   : > { %v1597_v57 = vpop.eup %1596  ;;  %1606 = vpow2.f32 %v691_v55  ;;  %v721_v58 = vmul.f32 1.442695, %v2257_v56  ;;  %v2261_v60 = vsub.f32 %v2132_v24, %v628_v14 }
 0x24a   : > { %757 = vadd.xlane.f32.xlu0 %v1597_v57  ;;  %v606_v19 = vpop.xlane.xlu0 %605 }
 0x24b   : > { %v1599_v61 = vpop.eup %1598  ;;  %1608 = vpow2.f32 %v721_v58  ;;  %v723_v62 = vmul.f32 1.442695, %v2261_v60  ;;  %v2265_v2 = vsub.f32 %v2135_v25, %v606_v19 }
 0x24c   : > { %v608_v23 = vpop.xlane.xlu1 %607  ;;  %759 = vadd.xlane.f32.xlu1 %v1599_v61 }
 0x24d   : > { %v1601_v3 = vpop.eup %1600  ;;  %1610 = vpow2.f32 %v723_v62  ;;  %v701_v54 = vmul.f32 1.442695, %v2265_v2  ;;  %v2269_v5 = vsub.f32 %v2140_v26, %v608_v23 }
 0x24e   : > { %789 = vadd.xlane.f32.xlu0 %v1601_v3  ;;  %v638_v24 = vpop.xlane.xlu0 %637 }
 0x24f   : > { %v1603_v6 = vpop.eup %1602  ;;  %1612 = vpow2.f32 %v701_v54  ;;  %v703_v59 = vmul.f32 1.442695, %v2269_v5  ;;  %v2273_v10 = vsub.f32 %v2143_v27, %v638_v24 }
 0x250   : > { %v640_v25 = vpop.xlane.xlu1 %639  ;;  %791 = vadd.xlane.f32.xlu1 %v1603_v6 }
 0x251   : > { %v1605_v63 = vpop.eup %1604  ;;  %1614 = vpow2.f32 %v703_v59  ;;  %v733_v11 = vmul.f32 1.442695, %v2273_v10  ;;  %v2277_v0 = vsub.f32 %v2148_v28, %v640_v25 }
 0x252   : > { %753 = vadd.xlane.f32.xlu0 %v1605_v63  ;;  %v602_v26 = vpop.xlane.xlu0 %601 }
 0x253   : > { %v1607_v15 = vpop.eup %1606  ;;  %1616 = vpow2.f32 %v733_v11  ;;  %v735_v16 = vmul.f32 1.442695, %v2277_v0  ;;  %v2281_v1 = vsub.f32 %v2152_v29, %v602_v26 }
 0x254   : > { %v604_v27 = vpop.xlane.xlu1 %603  ;;  %755 = vadd.xlane.f32.xlu1 %v1607_v15 }
 0x255   : > { %v1609_v18 = vpop.eup %1608  ;;  %1618 = vpow2.f32 %v735_v16  ;;  %v697_v20 = vmul.f32 1.442695, %v2281_v1  ;;  %v2285_v7 = vsub.f32 %v2156_v30, %v604_v27 }
 0x256   : > { %785 = vadd.xlane.f32.xlu0 %v1609_v18  ;;  %v634_v28 = vpop.xlane.xlu0 %633 }
 0x257   : > { %v1611_v22 = vpop.eup %1610  ;;  %1620 = vpow2.f32 %v697_v20  ;;  %v699_v43 = vmul.f32 1.442695, %v2285_v7  ;;  %v2289_v8 = vsub.f32 %v2160_v31, %v634_v28 }
 0x258   : > { %v636_v29 = vpop.xlane.xlu1 %635  ;;  %787 = vadd.xlane.f32.xlu1 %v1611_v22 }
 0x259   : > { %v1613_v46 = vpop.eup %1612  ;;  %1622 = vpow2.f32 %v699_v43  ;;  %v729_v50 = vmul.f32 1.442695, %v2289_v8  ;;  %v2293_v12 = vsub.f32 %v2164_v32, %v636_v29 }
 0x25a   : > { %765 = vadd.xlane.f32.xlu0 %v1613_v46  ;;  %v614_v30 = vpop.xlane.xlu0 %613 }
 0x25b   : > { %v1615_v53 = vpop.eup %1614  ;;  %1624 = vpow2.f32 %v729_v50  ;;  %v731_v55 = vmul.f32 1.442695, %v2293_v12  ;;  %v2297_v14 = vsub.f32 %v2167_v33, %v614_v30 }
 0x25c   : > { %v616_v31 = vpop.xlane.xlu1 %615  ;;  %767 = vadd.xlane.f32.xlu1 %v1615_v53 }
 0x25d   : > { %v1617_v57 = vpop.eup %1616  ;;  %1626 = vpow2.f32 %v731_v55  ;;  %v709_v58 = vmul.f32 1.442695, %v2297_v14  ;;  %v2301_v19 = vsub.f32 %v2172_v34, %v616_v31 }
 0x25e   : > { %797 = vadd.xlane.f32.xlu0 %v1617_v57  ;;  %v610_v32 = vpop.xlane.xlu0 %609 }
 0x25f   : > { %v1619_v61 = vpop.eup %1618  ;;  %1628 = vpow2.f32 %v709_v58  ;;  %v711_v62 = vmul.f32 1.442695, %v2301_v19  ;;  %v2305_v23 = vsub.f32 %v2176_v35, %v610_v32 }
 0x260   : > { %799 = vadd.xlane.f32.xlu1 %v1619_v61  ;;  %v612_v33 = vpop.xlane.xlu1 %611 }
 0x261   : > { %v1621_v3 = vpop.eup %1620  ;;  %1630 = vpow2.f32 %v711_v62  ;;  %v705_v54 = vmul.f32 1.442695, %v2305_v23  ;;  %v2309_v24 = vsub.f32 %v2180_v36, %v612_v33 }
 0x262   : > { %761 = vadd.xlane.f32.xlu0 %v1621_v3  ;;  %v642_v34 = vpop.xlane.xlu0 %641 }
 0x263   : > { %v1623_v6 = vpop.eup %1622  ;;  %1632 = vpow2.f32 %v705_v54  ;;  %v707_v59 = vmul.f32 1.442695, %v2309_v24  ;;  %v2313_v25 = vsub.f32 %v2183_v37, %v642_v34 }
 0x264   : > { %763 = vadd.xlane.f32.xlu1 %v1623_v6  ;;  %v644_v35 = vpop.xlane.xlu1 %643 }
 0x265   : > { %v1625_v63 = vpop.eup %1624  ;;  %1634 = vpow2.f32 %v707_v59  ;;  %v737_v11 = vmul.f32 1.442695, %v2313_v25  ;;  %v2317_v26 = vsub.f32 %v2188_v38, %v644_v35 }
 0x266   : > { %793 = vadd.xlane.f32.xlu0 %v1625_v63  ;;  %v646_v36 = vpop.xlane.xlu0 %645 }
 0x267   : > { %v1627_v15 = vpop.eup %1626  ;;  %1636 = vpow2.f32 %v737_v11  ;;  %v739_v16 = vmul.f32 1.442695, %v2317_v26  ;;  %v2321_v27 = vsub.f32 %v2192_v39, %v646_v36 }
 0x268   : > { %795 = vadd.xlane.f32.xlu1 %v1627_v15  ;;  %v648_v37 = vpop.xlane.xlu1 %647 }
 0x269   : > { %v1629_v18 = vpop.eup %1628  ;;  %1638 = vpow2.f32 %v739_v16  ;;  %v741_v20 = vmul.f32 1.442695, %v2321_v27  ;;  %v2325_v28 = vsub.f32 %v2196_v41, %v648_v37 }
 0x26a   : > { %773 = vadd.xlane.f32.xlu0 %v1629_v18 }
 0x26b   : > { %v1631_v38 = vpop.eup %1630  ;;  %1640 = vpow2.f32 %v741_v20  ;;  %v743_v22 = vmul.f32 1.442695, %v2325_v28 }
 0x26c   : > { %775 = vadd.xlane.f32.xlu1 %v1631_v38 }
 0x26d   : > { %v1633_v43 = vpop.eup %1632  ;;  %1642 = vpow2.f32 %v743_v22 }
 0x26e   : > { %769 = vadd.xlane.f32.xlu0 %v1633_v43 }
 0x26f   : > { %v1635_v39 = vpop.eup %1634 }
 0x270   : > { %771 = vadd.xlane.f32.xlu1 %v1635_v39 }
 0x271   : > { %v1637_v29 = vpop.eup %1636 }
 0x272   : > { %801 = vadd.xlane.f32.xlu0 %v1637_v29 }
 0x273   : > { %v1639_v46 = vpop.eup %1638 }
 0x274   : > { %803 = vadd.xlane.f32.xlu1 %v1639_v46 }
 0x275   : > { %v1641_v50 = vpop.eup %1640 }
 0x276   : > { %805 = vadd.xlane.f32.xlu0 %v1641_v50 }
 0x277   : > { %v1643_v30 = vpop.eup %1642 }
 0x278   : > { %807 = vadd.xlane.f32.xlu1 %v1643_v30 }
 0x2c7   : > { %v750_v41 = vpop.xlane.xlu0 %749 }
 0x2c8   : > { %1644 = vlog2.f32 %v750_v41 }
 0x2c9   : > { %v752_v53 = vpop.xlane.xlu1 %751 }
 0x2ca   : > { %1646 = vlog2.f32 %v752_v53 }
 0x2cb   : > { %v782_v55 = vpop.xlane.xlu0 %781 }
 0x2cc   : > { %1648 = vlog2.f32 %v782_v55 }
 0x2cd   : > { %v784_v31 = vpop.xlane.xlu1 %783 }
 0x2ce   : > { %1650 = vlog2.f32 %v784_v31 }
 0x2cf   : > { %v746_v57 = vpop.xlane.xlu0 %745 }
 0x2d0   : > { %1652 = vlog2.f32 %v746_v57 }
 0x2d1   : > { %v748_v58 = vpop.xlane.xlu1 %747 }
 0x2d2   : > { %v1645_v32 = vpop.eup %1644  ;;  %1654 = vlog2.f32 %v748_v58 }
 0x2d3   : > { %v814_v61 = vmul.f32 0.6931472, %v1645_v32  ;;  %v778_v62 = vpop.xlane.xlu0 %777 }
 0x2d4   : > { %v1647_v33 = vpop.eup %1646  ;;  %1656 = vlog2.f32 %v778_v62 }
 0x2d5   : > { %v816_v3 = vmul.f32 0.6931472, %v1647_v33  ;;  %v780_v54 = vpop.xlane.xlu1 %779  ;;  %v875_v6 = vsub.f32 %v2201_v44, %v814_v61 }
 0x2d6   : > { %v1649_v34 = vpop.eup %1648  ;;  %1658 = vlog2.f32 %v780_v54 }
 0x2d7   : > { %v876_v59 = vsub.f32 %v2205_v49, %v816_v3  ;;  %v846_v35 = vmul.f32 0.6931472, %v1649_v34  ;;  %v758_v63 = vpop.xlane.xlu0 %757 }
 0x2d8   : > { %v1651_v11 = vpop.eup %1650  ;;  %1660 = vlog2.f32 %v758_v63 }
 0x2d9   : > { %v1294_v36 = vpack.c.bf16 %v876_v59, %v875_v6  ;;  %v848_v15 = vmul.f32 0.6931472, %v1651_v11  ;;  %v760_v16 = vpop.xlane.xlu1 %759  ;;  %v891_v18 = vsub.f32 %v2209_v40, %v846_v35 }
 0x2da   : > { %v1653_v37 = vpop.eup %1652  ;;  %1662 = vlog2.f32 %v760_v16 }
 0x2db   : > { %1366 = vst [vmem:[%s2332_s24 + $0x8] sm:$0xff] %v1294_v36   ;;  %v892_v44 = vsub.f32 %v2213_v42, %v848_v15  ;;  %v810_v49 = vmul.f32 0.6931472, %v1653_v37  ;;  %v790_v20 = vpop.xlane.xlu0 %789 }
 0x2dc   : > { %v1655_v38 = vpop.eup %1654  ;;  %1664 = vlog2.f32 %v790_v20 }
 0x2dd   : > { %v1334_v22 = vpack.c.bf16 %v892_v44, %v891_v18  ;;  %v812_v43 = vmul.f32 0.6931472, %v1655_v38  ;;  %v792_v39 = vpop.xlane.xlu1 %791  ;;  %v873_v46 = vsub.f32 %v2217_v48, %v810_v49 }
 0x2de   : > { %v1657_v29 = vpop.eup %1656  ;;  %1666 = vlog2.f32 %v792_v39 }
 0x2df   : > { %1374 = vst [vmem:[%s2332_s24 + $0x48] sm:$0xff] %v1334_v22   ;;  %v874_v50 = vsub.f32 %v2221_v47, %v812_v43  ;;  %v842_v30 = vmul.f32 0.6931472, %v1657_v29  ;;  %v754_v41 = vpop.xlane.xlu0 %753 }
 0x2e0   : > { %v1659_v40 = vpop.eup %1658  ;;  %1668 = vlog2.f32 %v754_v41 }
 0x2e1   : > { %v1289_v42 = vpack.c.bf16 %v874_v50, %v873_v46  ;;  %v844_v53 = vmul.f32 0.6931472, %v1659_v40  ;;  %v756_v55 = vpop.xlane.xlu1 %755  ;;  %v889_v57 = vsub.f32 %v2225_v52, %v842_v30 }
 0x2e2   : > { %v1661_v31 = vpop.eup %1660  ;;  %1670 = vlog2.f32 %v756_v55 }
 0x2e3   : > { %1290 = vst [vmem:[%s2332_s24] sm:$0xff] %v1289_v42   ;;  %v890_v58 = vsub.f32 %v2229_v4, %v844_v53  ;;  %v822_v32 = vmul.f32 0.6931472, %v1661_v31  ;;  %v786_v61 = vpop.xlane.xlu0 %785 }
 0x2e4   : > { %v1663_v48 = vpop.eup %1662  ;;  %1672 = vlog2.f32 %v786_v61 }
 0x2e5   : > { %v1329_v47 = vpack.c.bf16 %v890_v58, %v889_v57  ;;  %v824_v62 = vmul.f32 0.6931472, %v1663_v48  ;;  %v788_v33 = vpop.xlane.xlu1 %787  ;;  %v879_v54 = vsub.f32 %v2233_v9, %v822_v32 }
 0x2e6   : > { %v1665_v3 = vpop.eup %1664  ;;  %1674 = vlog2.f32 %v788_v33 }
 0x2e7   : > { %1373 = vst [vmem:[%s2332_s24 + $0x40] sm:$0xff] %v1329_v47   ;;  %v880_v34 = vsub.f32 %v2237_v13, %v824_v62  ;;  %v854_v6 = vmul.f32 0.6931472, %v1665_v3  ;;  %v766_v59 = vpop.xlane.xlu0 %765 }
 0x2e8   : > { %v1667_v52 = vpop.eup %1666  ;;  %1676 = vlog2.f32 %v766_v59 }
 0x2e9   : > { %v1304_v4 = vpack.c.bf16 %v880_v34, %v879_v54  ;;  %v856_v35 = vmul.f32 0.6931472, %v1667_v52  ;;  %v768_v63 = vpop.xlane.xlu1 %767  ;;  %v895_v36 = vsub.f32 %v2241_v17, %v854_v6 }
 0x2ea   : > { %v1669_v11 = vpop.eup %1668  ;;  %1678 = vlog2.f32 %v768_v63 }
 0x2eb   : > { %1368 = vst [vmem:[%s2332_s24 + $0x18] sm:$0xff] %v1304_v4   ;;  %v896_v15 = vsub.f32 %v2245_v21, %v856_v35  ;;  %v818_v16 = vmul.f32 0.6931472, %v1669_v11  ;;  %v798_v37 = vpop.xlane.xlu0 %797 }
 0x2ec   : > { %v1671_v9 = vpop.eup %1670  ;;  %1680 = vlog2.f32 %v798_v37 }
 0x2ed   : > { %v1344_v13 = vpack.c.bf16 %v896_v15, %v895_v36  ;;  %v820_v18 = vmul.f32 0.6931472, %v1671_v9  ;;  %v800_v44 = vpop.xlane.xlu1 %799  ;;  %v877_v20 = vsub.f32 %v2249_v45, %v818_v16 }
 0x2ee   : > { %v1673_v49 = vpop.eup %1672  ;;  %1682 = vlog2.f32 %v800_v44 }
 0x2ef   : > { %1376 = vst [vmem:[%s2332_s24 + $0x58] sm:$0xff] %v1344_v13   ;;  %v878_v38 = vsub.f32 %v2253_v51, %v820_v18  ;;  %v850_v22 = vmul.f32 0.6931472, %v1673_v49  ;;  %v762_v43 = vpop.xlane.xlu0 %761 }
 0x2f0   : > { %v1675_v17 = vpop.eup %1674  ;;  %1684 = vlog2.f32 %v762_v43 }
 0x2f1   : > { %v1299_v21 = vpack.c.bf16 %v878_v38, %v877_v20  ;;  %v852_v39 = vmul.f32 0.6931472, %v1675_v17  ;;  %v764_v29 = vpop.xlane.xlu1 %763  ;;  %v893_v50 = vsub.f32 %v2257_v56, %v850_v22 }
 0x2f2   : > { %v1677_v46 = vpop.eup %1676  ;;  %1686 = vlog2.f32 %v764_v29 }
 0x2f3   : > { %1367 = vst [vmem:[%s2332_s24 + $0x10] sm:$0xff] %v1299_v21   ;;  %v894_v30 = vsub.f32 %v2261_v60, %v852_v39  ;;  %v830_v41 = vmul.f32 0.6931472, %v1677_v46  ;;  %v794_v40 = vpop.xlane.xlu0 %793 }
 0x2f4   : > { %v1679_v45 = vpop.eup %1678  ;;  %1688 = vlog2.f32 %v794_v40 }
 0x2f5   : > { %v1339_v51 = vpack.c.bf16 %v894_v30, %v893_v50  ;;  %v832_v42 = vmul.f32 0.6931472, %v1679_v45  ;;  %v796_v53 = vpop.xlane.xlu1 %795  ;;  %v883_v31 = vsub.f32 %v2265_v2, %v830_v41 }
 0x2f6   : > { %v1681_v55 = vpop.eup %1680  ;;  %1690 = vlog2.f32 %v796_v53 }
 0x2f7   : > { %1375 = vst [vmem:[%s2332_s24 + $0x50] sm:$0xff] %v1339_v51   ;;  %v884_v57 = vsub.f32 %v2269_v5, %v832_v42  ;;  %v862_v58 = vmul.f32 0.6931472, %v1681_v55  ;;  %v774_v32 = vpop.xlane.xlu0 %773 }
 0x2f8   : > { %v1683_v56 = vpop.eup %1682  ;;  %1692 = vlog2.f32 %v774_v32 }
 0x2f9   : > { %v1314_v60 = vpack.c.bf16 %v884_v57, %v883_v31  ;;  %v864_v61 = vmul.f32 0.6931472, %v1683_v56  ;;  %v776_v48 = vpop.xlane.xlu1 %775  ;;  %v899_v62 = vsub.f32 %v2273_v10, %v862_v58 }
 0x2fa   : > { %v1685_v47 = vpop.eup %1684  ;;  %1694 = vlog2.f32 %v776_v48 }
 0x2fb   : > { %1370 = vst [vmem:[%s2332_s24 + $0x28] sm:$0xff] %v1314_v60   ;;  %v900_v33 = vsub.f32 %v2277_v0, %v864_v61  ;;  %v826_v3 = vmul.f32 0.6931472, %v1685_v47  ;;  %v770_v54 = vpop.xlane.xlu0 %769 }
 0x2fc   : > { %v1687_v2 = vpop.eup %1686  ;;  %1696 = vlog2.f32 %v770_v54 }
 0x2fd   : > { %v1354_v5 = vpack.c.bf16 %v900_v33, %v899_v62  ;;  %v828_v34 = vmul.f32 0.6931472, %v1687_v2  ;;  %v772_v6 = vpop.xlane.xlu1 %771  ;;  %v881_v52 = vsub.f32 %v2281_v1, %v826_v3 }
 0x2fe   : > { %v1689_v59 = vpop.eup %1688  ;;  %1698 = vlog2.f32 %v772_v6 }
 0x2ff   : > { %1378 = vst [vmem:[%s2332_s24 + $0x68] sm:$0xff] %v1354_v5   ;;  %v882_v4 = vsub.f32 %v2285_v7, %v828_v34  ;;  %v858_v35 = vmul.f32 0.6931472, %v1689_v59  ;;  %v802_v63 = vpop.xlane.xlu0 %801 }
 0x300   : > { %v1691_v10 = vpop.eup %1690  ;;  %1700 = vlog2.f32 %v802_v63 }
 0x301   : > { %v1309_v0 = vpack.c.bf16 %v882_v4, %v881_v52  ;;  %v860_v11 = vmul.f32 0.6931472, %v1691_v10  ;;  %v804_v36 = vpop.xlane.xlu1 %803  ;;  %v897_v16 = vsub.f32 %v2289_v8, %v858_v35 }
 0x302   : > { %v1693_v15 = vpop.eup %1692  ;;  %1702 = vlog2.f32 %v804_v36 }
 0x303   : > { %1369 = vst [vmem:[%s2332_s24 + $0x20] sm:$0xff] %v1309_v0   ;;  %v898_v37 = vsub.f32 %v2293_v12, %v860_v11  ;;  %v838_v9 = vmul.f32 0.6931472, %v1693_v15  ;;  %v806_v13 = vpop.xlane.xlu0 %805 }
 0x304   : > { %v1695_v1 = vpop.eup %1694  ;;  %1704 = vlog2.f32 %v806_v13 }
 0x305   : > { %v1349_v7 = vpack.c.bf16 %v898_v37, %v897_v16  ;;  %v840_v18 = vmul.f32 0.6931472, %v1695_v1  ;;  %v808_v44 = vpop.xlane.xlu1 %807  ;;  %v887_v20 = vsub.f32 %v2297_v14, %v838_v9 }
 0x306   : > { %v1697_v49 = vpop.eup %1696  ;;  %1706 = vlog2.f32 %v808_v44 }
 0x307   : > { %1377 = vst [vmem:[%s2332_s24 + $0x60] sm:$0xff] %v1349_v7   ;;  %v888_v38 = vsub.f32 %v2301_v19, %v840_v18  ;;  %v834_v22 = vmul.f32 0.6931472, %v1697_v49 }
 0x308   : > { %v1699_v8 = vpop.eup %1698 }
 0x309   : > { %v1324_v43 = vpack.c.bf16 %v888_v38, %v887_v20  ;;  %v836_v12 = vmul.f32 0.6931472, %v1699_v8  ;;  %v885_v21 = vsub.f32 %v2305_v23, %v834_v22 }
 0x30a   : > { %v1701_v17 = vpop.eup %1700 }
 0x30b   : > { %1372 = vst [vmem:[%s2332_s24 + $0x38] sm:$0xff] %v1324_v43   ;;  %v886_v39 = vsub.f32 %v2309_v24, %v836_v12  ;;  %v866_v29 = vmul.f32 0.6931472, %v1701_v17 }
 0x30c   : > { %v1703_v46 = vpop.eup %1702 }
 0x30d   : > { %v1319_v50 = vpack.c.bf16 %v886_v39, %v885_v21  ;;  %v868_v30 = vmul.f32 0.6931472, %v1703_v46  ;;  %v901_v19 = vsub.f32 %v2313_v25, %v866_v29 }
 0x30e   : > { %v1705_v14 = vpop.eup %1704 }
 0x30f   : > { %1371 = vst [vmem:[%s2332_s24 + $0x30] sm:$0xff] %v1319_v50   ;;  %v902_v41 = vsub.f32 %v2317_v26, %v868_v30  ;;  %v870_v40 = vmul.f32 0.6931472, %v1705_v14 }
 0x310   : > { %v1707_v45 = vpop.eup %1706 }
 0x311   : > { %v1359_v51 = vpack.c.bf16 %v902_v41, %v901_v19  ;;  %v872_v23 = vmul.f32 0.6931472, %v1707_v45  ;;  %v903_v24 = vsub.f32 %v2321_v27, %v870_v40 }
 0x313   : > { %1379 = vst [vmem:[%s2332_s24 + $0x70] sm:$0xff] %v1359_v51   ;;  %v904_v42 = vsub.f32 %v2325_v28, %v872_v23 }
 0x315   : > { %v1364_v25 = vpack.c.bf16 %v904_v42, %v903_v24 }
 0x317   : > { %1380 = vst [vmem:[%s2332_s24 + $0x78] sm:$0xff] %v1364_v25  }
 0x318   : > { %1779 = shalt.err (!%p1776_p5)
}
 0x319   : > { %s1780_s25 = scalar_lea.hbm %s2384_s26, 2048  ;;  %s1784_s6 = scalar_lea.hbm %s2439_s3, 4096 }
 0x31a   : > { %p1781_p9 = scmp.ne.s32.totalorder %s2384_s26, %s1780_s25  ;;  %p1785_p3 = scmp.lt.u32.totalorder %s2384_s26, %s2439_s3 }
 0x31b   : > { %p1786_p7 = scmp.lt.u32.totalorder %s1784_s6, %s1780_s25  ;;  %p1788_p4 = scmp.lt.u32.totalorder %s1780_s25, %s2384_s26 }
 0x31c   : > { %p1782_p1 = pnand %p1781_p9, %p1979_p10 }
 0x31d   : > { %p1787_p13 = por %p1786_p7, %p1785_p3 }
 0x31e   : > { %p1783_p2 = pneg %p1782_p1 }
 0x31f   : > { %p1789_p6 = por %p1788_p4, %p1787_p13 }
 0x321   : > { %p1790_p8 = pnand %p1789_p6, %p1783_p2 }
 0x323   : > { %1793 = shalt.err (!%p1790_p8)
}
 0x324   : > { %s1861_s24 = smov 64   ;;  %s1862_s9 = smov 4  }
 0x325   : > { %1475 = dma.vmem_to_hbm [thread:$0]  (%p1979_p10), %s2386_s10, 2048, %s2384_s26, %s1066_s7, %s1861_s24, %s1861_s24, %s1862_s9  }
 0x326 PF: > { %s1096_s11 = sand.u32 1, %s1832_s12   ;;  %p2457_p12 = scmp.ne.s32.totalorder %s2447_s23, 0 }
 0x327   : > { %p2458_p11 = scmp.ge.s32.totalorder %s1852_s17, 2  ;;  %s1097_s18 = scalar_lea.sflag [#allocation4], %s1096_s11 }
 0x329   : > { %p1486_p0 = pnand %p2458_p11, %p2457_p12 }
 0x32b   : > { %1827 = dma.done.wait (!%p1486_p0), %s1097_s18, 2048  }
 0x32c   : > { %1829 = vsyncadd (!%p1486_p0), %s1097_s18, 4294965248  ;;  %s20_s17 = sadd.s32 1, %s1852_s17   ;;  %s2459_s12 = smov %s1836_s13 }
 0x32d   : > { %p17_p5 = scmp.ge.s32.totalorder %s20_s17, 4   ;;  %s2460_s13 = smov %s1840_s14 }
 0x32e   : > { %s2461_s14 = smov %s1988_s5  ;;  %s2462_s15 = smov %s1848_s16 }
 0x32f   : > { %s2463_s16 = smov %s2465_s28  ;;  %19 = sbr.rel (!%p17_p5) target bundleno = 7 (0x7), region = 81 }
 0x336   :  { %1102 = vsyncpa [#allocation3], 1 }
 0x337   :  { %1104 = vsyncpa [#allocation3 + $0x1], 1 }
 0x338   :  { %1105 = vsyncpa [#allocation6], 1 }
 0x339   :  { %1106 = vsyncpa [#allocation4], 1 }
 0x33a   :  { %1108 = vsyncpa [#allocation4 + $0x1], 1 }

</bundles_post_ra>
